<compile_context>
chip_gen: v7x
topology: tpu7x:2x2x1
jax: 0.10.0
libtpu: 0.0.40
codegen_flags: <defaults>
</compile_context>

<pallas_src>
import functools

import numpy as np
import jax
import jax.numpy as jnp
from jax import lax
from jax.experimental import pallas as pl
from jax.experimental.pallas import tpu as pltpu  # noqa: F401  (TPU backend)

B = 2
H = W = 8              # input spatial size implied by fc(20, 10)
C1_OUT = 10
C2_OUT = 20
FC_OUT = 10
PH = PW = 3            # spatial size after 2x2 max-pool of the 6x6 conv1 output
NPOS = PH * PW         # 9 pooled positions
NFEAT = NPOS * C1_OUT  # 90 features entering conv2
CHUNK = 128            # lane-padded width of one pooling-offset chunk
NCOL = 4 * CHUNK       # 512 conv1 columns: (offset q, pooled pos p, channel c)
BN_EPS = 1e-5
OFFSETS = ((0, 0), (0, 1), (1, 0), (1, 1))   # 2x2 max-pool offsets (dy, dx)

# --- packed-parameter row layout (big pack: width 512) ---
ROW_W1 = 0                 # rows 0..63 : im2col-folded conv1 weight (64, 512)
ROW_B1 = 64                # conv1 bias broadcast to the 512 columns
ROW_BETA = 65              # BN beta broadcast to the 512 columns
ROW_GAMMA = 66             # BN gamma           (cols 0:10)
ROW_B2 = 67                # conv2 bias         (cols 0:20)
ROW_BFC = 68               # fc bias            (cols 0:10)
ROW_MT = 72                # rows 72..81 : channel -> column broadcast (10, 512)
BIG_ROWS = 88

# --- packed-parameter row layout (small pack: width 20) ---
ROW_M = 0                  # rows 0..511  : column -> channel reduce (512, 10)
ROW_W2 = NCOL              # rows 512..639: conv2-as-matmul weight (rows 90+ = 0)
ROW_WFC = ROW_W2 + CHUNK   # rows 640..659: fc weight^T (20, 10)
SMALL_ROWS = 664


def _convnn_kernel(x_ref, big_ref, small_ref, out_ref, *, batch):
    """Fused conv1+BN+ReLU+maxpool+conv2+ReLU+fc; all intermediates stay in VMEM."""
    cnt = float(4 * NPOS * batch)                 # BN sample count per channel (B*6*6)

    x = x_ref[...]                                # (B, 64) flattened image

    w1 = big_ref[ROW_W1:ROW_W1 + H * W, :]        # (64, 512)
    b1 = big_ref[ROW_B1:ROW_B1 + 1, :]            # (1, 512)
    beta = big_ref[ROW_BETA:ROW_BETA + 1, :]      # (1, 512)
    gamma = big_ref[ROW_GAMMA:ROW_GAMMA + 1, 0:C1_OUT]   # (1, 10)
    b2 = big_ref[ROW_B2:ROW_B2 + 1, 0:C2_OUT]            # (1, 20)
    bfc = big_ref[ROW_BFC:ROW_BFC + 1, 0:FC_OUT]         # (1, 10)
    mt = big_ref[ROW_MT:ROW_MT + C1_OUT, :]              # (10, 512)

    m = small_ref[ROW_M:ROW_M + NCOL, 0:C1_OUT]          # (512, 10)
    w2 = small_ref[ROW_W2:ROW_W2 + CHUNK, :]             # (128, 20)
    wfc = small_ref[ROW_WFC:ROW_WFC + C2_OUT, 0:FC_OUT]  # (20, 10)

    # conv1 for all 36 windows (4 pool offsets x 9 pooled positions): ONE matmul.
    y = jnp.dot(x, w1, preferred_element_type=jnp.float32) + b1        # (B, 512)

    # BatchNorm2d, training-mode batch stats, two-pass (numerically safe) variance.
    col_sum = jnp.sum(y, axis=0, keepdims=True)                         # (1, 512)
    mean_c = jnp.dot(col_sum, m, preferred_element_type=jnp.float32) * (1.0 / cnt)  # (1, 10)
    mean_b = jnp.dot(mean_c, mt, preferred_element_type=jnp.float32)    # (1, 512)
    d = y - mean_b                                                      # (B, 512)
    var_c = jnp.dot(jnp.sum(d * d, axis=0, keepdims=True), m,
                    preferred_element_type=jnp.float32) * (1.0 / cnt)   # (1, 10)
    var_c = jnp.maximum(var_c, 0.0)
    scale_c = gamma * lax.rsqrt(var_c + BN_EPS)                         # (1, 10)
    scale_b = jnp.dot(scale_c, mt, preferred_element_type=jnp.float32)  # (1, 512)

    # BN affine + ReLU (dead padded columns remain exactly 0).
    a = jnp.maximum(d * scale_b + beta, 0.0)                            # (B, 512)

    # MaxPool2d(2): elementwise max over the four 128-lane-aligned offset chunks.
    pooled = jnp.maximum(
        jnp.maximum(a[:, 0:CHUNK], a[:, CHUNK:2 * CHUNK]),
        jnp.maximum(a[:, 2 * CHUNK:3 * CHUNK], a[:, 3 * CHUNK:4 * CHUNK]))  # (B, 128)

    # conv2 (3x3 kernel over the 3x3 pooled map -> 1x1) as matmul + ReLU, then fc.
    z = jnp.maximum(jnp.dot(pooled, w2, preferred_element_type=jnp.float32) + b2, 0.0)  # (B, 20)
    out_ref[...] = jnp.dot(z, wfc, preferred_element_type=jnp.float32) + bfc            # (B, 10)


def prepare_params(params):
    """One-time host-side packing: fold im2col into conv1's weight and pack all
    parameters into two lane-friendly arrays (cuts ~10 tiny DMAs down to 2)."""
    w1 = np.asarray(params["w1"], np.float32)     # (10, 1, 3, 3)
    b1 = np.asarray(params["b1"], np.float32)
    gamma = np.asarray(params["gamma"], np.float32)
    beta = np.asarray(params["beta"], np.float32)
    w2 = np.asarray(params["w2"], np.float32)     # (20, 10, 3, 3)
    b2 = np.asarray(params["b2"], np.float32)
    wfc = np.asarray(params["wfc"], np.float32)   # (10, 20)
    bfc = np.asarray(params["bfc"], np.float32)

    w1_big = np.zeros((H * W, NCOL), np.float32)   # pixel -> (q, p, c) column
    b1_big = np.zeros((NCOL,), np.float32)
    beta_big = np.zeros((NCOL,), np.float32)
    m_red = np.zeros((NCOL, C1_OUT), np.float32)   # column -> channel (0/1)
    for q, (dy, dx) in enumerate(OFFSETS):
        for ph in range(PH):
            for pw in range(PW):
                p = ph * PW + pw
                oh, ow = 2 * ph + dy, 2 * pw + dx         # conv1 output position
                for c in range(C1_OUT):
                    col = q * CHUNK + p * C1_OUT + c
                    b1_big[col] = b1[c]
                    beta_big[col] = beta[c]
                    m_red[col, c] = 1.0
                    for ki in range(3):
                        for kj in range(3):
                            w1_big[(oh + ki) * W + (ow + kj), col] = w1[c, 0, ki, kj]

    big = np.zeros((BIG_ROWS, NCOL), np.float32)
    big[ROW_W1:ROW_W1 + H * W] = w1_big
    big[ROW_B1] = b1_big
    big[ROW_BETA] = beta_big
    big[ROW_GAMMA, :C1_OUT] = gamma
    big[ROW_B2, :C2_OUT] = b2
    big[ROW_BFC, :FC_OUT] = bfc
    big[ROW_MT:ROW_MT + C1_OUT] = m_red.T          # channel -> column broadcast

    small = np.zeros((SMALL_ROWS, C2_OUT), np.float32)
    small[ROW_M:ROW_M + NCOL, :C1_OUT] = m_red
    # conv2 weight in (ph, pw, cin) row order, padded to 128 rows (rows 90+ stay 0)
    small[ROW_W2:ROW_W2 + NFEAT] = w2.transpose(2, 3, 1, 0).reshape(NFEAT, C2_OUT)
    small[ROW_WFC:ROW_WFC + C2_OUT, :FC_OUT] = wfc.T

    return jnp.asarray(big), jnp.asarray(small)


@jax.jit
def convnn_forward(x, big_pack, small_pack):
    b = x.shape[0]
    x_flat = x.reshape(b, H * W).astype(jnp.float32)    # free bitcast, no im2col op
    return pl.pallas_call(
        functools.partial(_convnn_kernel, batch=b),
        out_shape=jax.ShapeDtypeStruct((b, FC_OUT), jnp.float32),
        grid=(1,),
        in_specs=[
            pl.BlockSpec((b, H * W), lambda i: (0, 0)),
            pl.BlockSpec((BIG_ROWS, NCOL), lambda i: (0, 0)),
            pl.BlockSpec((SMALL_ROWS, C2_OUT), lambda i: (0, 0)),
        ],
        out_specs=pl.BlockSpec((b, FC_OUT), lambda i: (0, 0)),
    )(x_flat, big_pack, small_pack)


def reference_forward(x, params):
    """Pure-JAX reference mirroring the PyTorch forward (training-mode BN)."""
    y = lax.conv_general_dilated(x, params["w1"], (1, 1), "VALID",
                                 dimension_numbers=("NCHW", "OIHW", "NCHW"))
    y = y + params["b1"].reshape(1, -1, 1, 1)
    mean = jnp.mean(y, axis=(0, 2, 3), keepdims=True)
    var = jnp.mean((y - mean) ** 2, axis=(0, 2, 3), keepdims=True)
    y = (y - mean) / jnp.sqrt(var + BN_EPS)
    y = y * params["gamma"].reshape(1, -1, 1, 1) + params["beta"].reshape(1, -1, 1, 1)
    y = jnp.maximum(y, 0.0)
    b = y.shape[0]
    y = y.reshape(b, C1_OUT, PH, 2, PW, 2).max(axis=(3, 5))     # MaxPool2d(2)
    z = lax.conv_general_dilated(y, params["w2"], (1, 1), "VALID",
                                 dimension_numbers=("NCHW", "OIHW", "NCHW"))
    z = z + params["b2"].reshape(1, -1, 1, 1)
    z = jnp.maximum(z, 0.0).reshape(b, -1)                       # (B, 20)
    return z @ params["wfc"].T + params["bfc"]


if __name__ == "__main__":
    key = jax.random.PRNGKey(0)
    kx, k1, k2, k3, k4, k5, k6 = jax.random.split(key, 7)
    params = {
        "w1": jax.random.normal(k1, (C1_OUT, 1, 3, 3), jnp.float32) / 3.0,
        "b1": jax.random.normal(k2, (C1_OUT,), jnp.float32) * 0.1,
        "gamma": jnp.ones((C1_OUT,), jnp.float32),   # BatchNorm2d default init
        "beta": jnp.zeros((C1_OUT,), jnp.float32),
        "w2": jax.random.normal(k3, (C2_OUT, C1_OUT, 3, 3), jnp.float32) / jnp.sqrt(90.0),
        "b2": jax.random.normal(k4, (C2_OUT,), jnp.float32) * 0.1,
        "wfc": jax.random.normal(k5, (FC_OUT, C2_OUT), jnp.float32) / jnp.sqrt(20.0),
        "bfc": jax.random.normal(k6, (FC_OUT,), jnp.float32) * 0.1,
    }
    x = jax.random.normal(kx, (B, 1, H, W), jnp.float32)

    big_pack, small_pack = prepare_params(params)   # one-time packing (off hot path)

    out = jax.block_until_ready(convnn_forward(x, big_pack, small_pack))
    ref = jax.block_until_ready(reference_forward(x, params))
    err = float(jnp.max(jnp.abs(out - ref)))
    print("output shape:", out.shape, "max |pallas - ref| =", err)
    print("KERNEL_OK")
</pallas_src>

<mosaic_0001>
module attributes {stable_mosaic.version = 11 : i64} {
  func.func @_convnn_kernel(%arg0: i32, %arg1: memref<2x64xf32, #tpu.memory_space<vmem>>, %arg2: memref<88x512xf32, #tpu.memory_space<vmem>>, %arg3: memref<664x20xf32, #tpu.memory_space<vmem>>, %arg4: memref<2x10xf32, #tpu.memory_space<vmem>>) attributes {dimension_semantics = [#tpu.dimension_semantics<arbitrary>], iteration_bounds = array<i64: 1>, scalar_prefetch = 0 : i64, scratch_operands = 0 : i64, tpu.core_type = #tpu.core_type<tc>, window_params = [{pipeline_mode = #tpu.pipeline_mode<synchronous>, transform_indices = @transform_0, window_bounds = array<i64: 2, 64>}, {pipeline_mode = #tpu.pipeline_mode<synchronous>, transform_indices = @transform_1, window_bounds = array<i64: 88, 512>}, {pipeline_mode = #tpu.pipeline_mode<synchronous>, transform_indices = @transform_2, window_bounds = array<i64: 664, 20>}, {pipeline_mode = #tpu.pipeline_mode<synchronous>, transform_indices = @transform_3, window_bounds = array<i64: 2, 10>}]} {
    %c0 = arith.constant 0 : index
    %c0_0 = arith.constant 0 : index
    %0 = vector.load %arg1[%c0, %c0_0] : memref<2x64xf32, #tpu.memory_space<vmem>>, vector<2x64xf32>
    %c0_1 = arith.constant 0 : index
    %c0_2 = arith.constant 0 : index
    %1 = vector.load %arg2[%c0_1, %c0_2] : memref<88x512xf32, #tpu.memory_space<vmem>>, vector<64x512xf32>
    %c64 = arith.constant 64 : index
    %c0_3 = arith.constant 0 : index
    %2 = vector.load %arg2[%c64, %c0_3] : memref<88x512xf32, #tpu.memory_space<vmem>>, vector<1x512xf32>
    %c65 = arith.constant 65 : index
    %c0_4 = arith.constant 0 : index
    %3 = vector.load %arg2[%c65, %c0_4] : memref<88x512xf32, #tpu.memory_space<vmem>>, vector<1x512xf32>
    %c66 = arith.constant 66 : index
    %c0_5 = arith.constant 0 : index
    %4 = vector.load %arg2[%c66, %c0_5] : memref<88x512xf32, #tpu.memory_space<vmem>>, vector<1x10xf32>
    %c67 = arith.constant 67 : index
    %c0_6 = arith.constant 0 : index
    %5 = vector.load %arg2[%c67, %c0_6] : memref<88x512xf32, #tpu.memory_space<vmem>>, vector<1x20xf32>
    %c68 = arith.constant 68 : index
    %c0_7 = arith.constant 0 : index
    %6 = vector.load %arg2[%c68, %c0_7] : memref<88x512xf32, #tpu.memory_space<vmem>>, vector<1x10xf32>
    %c72 = arith.constant 72 : index
    %c0_8 = arith.constant 0 : index
    %7 = vector.load %arg2[%c72, %c0_8] : memref<88x512xf32, #tpu.memory_space<vmem>>, vector<10x512xf32>
    %c0_9 = arith.constant 0 : index
    %c0_10 = arith.constant 0 : index
    %8 = vector.load %arg3[%c0_9, %c0_10] : memref<664x20xf32, #tpu.memory_space<vmem>>, vector<512x10xf32>
    %c512 = arith.constant 512 : index
    %c0_11 = arith.constant 0 : index
    %9 = vector.load %arg3[%c512, %c0_11] : memref<664x20xf32, #tpu.memory_space<vmem>>, vector<128x20xf32>
    %c640 = arith.constant 640 : index
    %c0_12 = arith.constant 0 : index
    %10 = vector.load %arg3[%c640, %c0_12] : memref<664x20xf32, #tpu.memory_space<vmem>>, vector<20x10xf32>
    %cst = arith.constant dense<0.000000e+00> : vector<2x512xf32>
    %11 = tpu.matmul %0, %1, %cst {dimension_numbers = #tpu.dot_dimension_numbers<[1], [0], [0], [1], [0, 0, 1, 1], [], []>} : vector<2x64xf32>, vector<64x512xf32>, vector<2x512xf32> -> vector<2x512xf32>
    %12 = vector.broadcast %2 : vector<1x512xf32> to vector<2x512xf32>
    %13 = arith.addf %11, %12 : vector<2x512xf32>
    %cst_13 = arith.constant dense<0.000000e+00> : vector<512xf32>
    %14 = vector.multi_reduction <add>, %13, %cst_13 [0] : vector<2x512xf32> to vector<512xf32>
    %15 = vector.shape_cast %14 : vector<512xf32> to vector<1x512xf32>
    %cst_14 = arith.constant dense<0.000000e+00> : vector<1x10xf32>
    %16 = tpu.matmul %15, %8, %cst_14 {dimension_numbers = #tpu.dot_dimension_numbers<[1], [0], [0], [1], [0, 0, 1, 1], [], []>} : vector<1x512xf32>, vector<512x10xf32>, vector<1x10xf32> -> vector<1x10xf32>
    %cst_15 = arith.constant 0.013888889 : f32
    %17 = vector.broadcast %cst_15 : f32 to vector<1x10xf32>
    %18 = arith.mulf %16, %17 : vector<1x10xf32>
    %cst_16 = arith.constant dense<0.000000e+00> : vector<1x512xf32>
    %19 = tpu.matmul %18, %7, %cst_16 {dimension_numbers = #tpu.dot_dimension_numbers<[1], [0], [0], [1], [0, 0, 1, 1], [], []>} : vector<1x10xf32>, vector<10x512xf32>, vector<1x512xf32> -> vector<1x512xf32>
    %20 = vector.broadcast %19 : vector<1x512xf32> to vector<2x512xf32>
    %21 = arith.subf %13, %20 : vector<2x512xf32>
    %22 = arith.mulf %21, %21 : vector<2x512xf32>
    %cst_17 = arith.constant dense<0.000000e+00> : vector<512xf32>
    %23 = vector.multi_reduction <add>, %22, %cst_17 [0] : vector<2x512xf32> to vector<512xf32>
    %24 = vector.shape_cast %23 : vector<512xf32> to vector<1x512xf32>
    %cst_18 = arith.constant dense<0.000000e+00> : vector<1x10xf32>
    %25 = tpu.matmul %24, %8, %cst_18 {dimension_numbers = #tpu.dot_dimension_numbers<[1], [0], [0], [1], [0, 0, 1, 1], [], []>} : vector<1x512xf32>, vector<512x10xf32>, vector<1x10xf32> -> vector<1x10xf32>
    %cst_19 = arith.constant 0.013888889 : f32
    %26 = vector.broadcast %cst_19 : f32 to vector<1x10xf32>
    %27 = arith.mulf %25, %26 : vector<1x10xf32>
    %cst_20 = arith.constant 0.000000e+00 : f32
    %28 = vector.broadcast %cst_20 : f32 to vector<1x10xf32>
    %29 = arith.maximumf %27, %28 : vector<1x10xf32>
    %cst_21 = arith.constant 9.99999974E-6 : f32
    %30 = vector.broadcast %cst_21 : f32 to vector<1x10xf32>
    %31 = arith.addf %29, %30 : vector<1x10xf32>
    %32 = math.rsqrt %31 : vector<1x10xf32>
    %33 = arith.mulf %4, %32 : vector<1x10xf32>
    %cst_22 = arith.constant dense<0.000000e+00> : vector<1x512xf32>
    %34 = tpu.matmul %33, %7, %cst_22 {dimension_numbers = #tpu.dot_dimension_numbers<[1], [0], [0], [1], [0, 0, 1, 1], [], []>} : vector<1x10xf32>, vector<10x512xf32>, vector<1x512xf32> -> vector<1x512xf32>
    %35 = vector.broadcast %34 : vector<1x512xf32> to vector<2x512xf32>
    %36 = arith.mulf %21, %35 : vector<2x512xf32>
    %37 = vector.broadcast %3 : vector<1x512xf32> to vector<2x512xf32>
    %38 = arith.addf %36, %37 : vector<2x512xf32>
    %cst_23 = arith.constant 0.000000e+00 : f32
    %39 = vector.broadcast %cst_23 : f32 to vector<2x512xf32>
    %40 = arith.maximumf %38, %39 : vector<2x512xf32>
    %41 = vector.extract_strided_slice %40 {offsets = [0, 0], sizes = [2, 128], strides = [1, 1]} : vector<2x512xf32> to vector<2x128xf32>
    %42 = vector.extract_strided_slice %40 {offsets = [0, 128], sizes = [2, 128], strides = [1, 1]} : vector<2x512xf32> to vector<2x128xf32>
    %43 = arith.maximumf %41, %42 : vector<2x128xf32>
    %44 = vector.extract_strided_slice %40 {offsets = [0, 256], sizes = [2, 128], strides = [1, 1]} : vector<2x512xf32> to vector<2x128xf32>
    %45 = vector.extract_strided_slice %40 {offsets = [0, 384], sizes = [2, 128], strides = [1, 1]} : vector<2x512xf32> to vector<2x128xf32>
    %46 = arith.maximumf %44, %45 : vector<2x128xf32>
    %47 = arith.maximumf %43, %46 : vector<2x128xf32>
    %cst_24 = arith.constant dense<0.000000e+00> : vector<2x20xf32>
    %48 = tpu.matmul %47, %9, %cst_24 {dimension_numbers = #tpu.dot_dimension_numbers<[1], [0], [0], [1], [0, 0, 1, 1], [], []>} : vector<2x128xf32>, vector<128x20xf32>, vector<2x20xf32> -> vector<2x20xf32>
    %49 = vector.broadcast %5 : vector<1x20xf32> to vector<2x20xf32>
    %50 = arith.addf %48, %49 : vector<2x20xf32>
    %cst_25 = arith.constant 0.000000e+00 : f32
    %51 = vector.broadcast %cst_25 : f32 to vector<2x20xf32>
    %52 = arith.maximumf %50, %51 : vector<2x20xf32>
    %cst_26 = arith.constant dense<0.000000e+00> : vector<2x10xf32>
    %53 = tpu.matmul %52, %10, %cst_26 {dimension_numbers = #tpu.dot_dimension_numbers<[1], [0], [0], [1], [0, 0, 1, 1], [], []>} : vector<2x20xf32>, vector<20x10xf32>, vector<2x10xf32> -> vector<2x10xf32>
    %54 = vector.broadcast %6 : vector<1x10xf32> to vector<2x10xf32>
    %55 = arith.addf %53, %54 : vector<2x10xf32>
    %c0_27 = arith.constant 0 : index
    %c0_28 = arith.constant 0 : index
    %56 = vector.load %arg4[%c0_27, %c0_28] : memref<2x10xf32, #tpu.memory_space<vmem>>, vector<2x10xf32>
    tpu.vector_store %arg4[%c0_27, %c0_28], %55 {strides = array<i32>} : memref<2x10xf32, #tpu.memory_space<vmem>>, vector<2x10xf32>,
    return
  }
  func.func @transform_0(%arg0: i32) -> (i32, i32) {
    %c0_i32 = arith.constant 0 : i32
    %c0_i32_0 = arith.constant 0 : i32
    %c0_i32_1 = arith.constant 0 : i32
    return %c0_i32, %c0_i32_0 : i32, i32
  }
  func.func @transform_1(%arg0: i32) -> (i32, i32) {
    %c0_i32 = arith.constant 0 : i32
    %c0_i32_0 = arith.constant 0 : i32
    %c0_i32_1 = arith.constant 0 : i32
    return %c0_i32, %c0_i32_0 : i32, i32
  }
  func.func @transform_2(%arg0: i32) -> (i32, i32) {
    %c0_i32 = arith.constant 0 : i32
    %c0_i32_0 = arith.constant 0 : i32
    %c0_i32_1 = arith.constant 0 : i32
    return %c0_i32, %c0_i32_0 : i32, i32
  }
  func.func @transform_3(%arg0: i32) -> (i32, i32) {
    %c0_i32 = arith.constant 0 : i32
    %c0_i32_0 = arith.constant 0 : i32
    %c0_i32_1 = arith.constant 0 : i32
    return %c0_i32, %c0_i32_0 : i32, i32
  }
}

</mosaic_0001>

<bundles_post_ra>
// kernel: convnn_forward.1
= control target key start
LH: loop header
LB: loop body
LE: loop exit
PB: predicated region body
PF: predicated region fallthrough
CT: control target
= control target key end

     0   :  { %v1665_v7 = vmov 0.0   ;;  %vm167_vm0 = vcmask 523264   ;;  %s2335_s0 = inlined_call_operand.vmem [shape: f32[2,64], index: 0, kind: input, shape index: {}]   ;;  %s2336_s1 = inlined_call_operand.vmem [shape: f32[88,512], index: 1, kind: input, shape index: {}]   ;;  %s2337_s2 = inlined_call_operand.vmem [shape: f32[664,20], index: 2, kind: input, shape index: {}]   ;;  %s2338_s3 = inlined_call_operand.hbm [shape: f32[2,10], index: 3, kind: output, shape index: {}]  }
   0x1   :  { %v17_v0 = vld [vmem:[%s2336_s1 + $0x8] sm:$0xff]  ;;  %v16_v2 = vld [vmem:[%s2336_s1] sm:$0xff]  ;;  %235 = vmatprep.mubr.f32.mxu1 %v1665_v7  ;;  %v19_v24 = vld [vmem:[%s2336_s1 + $0x18] sm:$0xff] }
   0x2   :  { %v21_v1 = vld [vmem:[%s2336_s1 + $0x28] sm:$0xff]  ;;  %v20_v4 = vld [vmem:[%s2336_s1 + $0x20] sm:$0xff]  ;;  %v23_v25 = vld [vmem:[%s2336_s1 + $0x38] sm:$0xff] }
   0x3   :  { %v1423_v3 = vpack.c.bf16 %v21_v1, %v17_v0  ;;  %v25_v5 = vld [vmem:[%s2336_s1 + $0x48] sm:$0xff]  ;;  %v1425_v8 = vpack.c.bf16 %v20_v4, %v16_v2  ;;  %v24_v10 = vld [vmem:[%s2336_s1 + $0x40] sm:$0xff]  ;;  %v18_v26 = vld [vmem:[%s2336_s1 + $0x10] sm:$0xff]  ;;  %v1439_v36 = vpack.c.bf16 %v23_v25, %v19_v24 }
   0x4   :  { %v29_v6 = vld [vmem:[%s2336_s1 + $0x68] sm:$0xff]  ;;  %v28_v11 = vld [vmem:[%s2336_s1 + $0x60] sm:$0xff]  ;;  %v22_v27 = vld [vmem:[%s2336_s1 + $0x30] sm:$0xff] }
   0x5   :  { %v1427_v9 = vpack.c.bf16 %v29_v6, %v25_v5  ;;  %v33_v12 = vld [vmem:[%s2336_s1 + $0x88] sm:$0xff]  ;;  %1424 = vmatprep.subr.bf16.mxu1 %v1423_v3  ;;  %v1429_v14 = vpack.c.bf16 %v28_v11, %v24_v10  ;;  %v32_v16 = vld [vmem:[%s2336_s1 + $0x80] sm:$0xff]  ;;  %v81_v34 = vld [vmem:[%s2337_s2 + $0x90] sm:$0xff]  ;;  %v1441_v48 = vpack.c.bf16 %v22_v27, %v18_v26 }
   0x6   :  { %v37_v13 = vld [vmem:[%s2336_s1 + $0xa8] sm:$0xff]  ;;  %1426 = vmatpush1.bf16.msra.mxu1 %v1425_v8  ;;  %v36_v17 = vld [vmem:[%s2336_s1 + $0xa0] sm:$0xff]  ;;  %v82_v35 = vld [vmem:[%s2337_s2 + $0x98] sm:$0xff] }
   0x7   :  { %1428 = vmatprep.subr.bf16.mxu1 %v1427_v9  ;;  %v1431_v15 = vpack.c.bf16 %v37_v13, %v33_v12  ;;  %v41_v18 = vld [vmem:[%s2336_s1 + $0xc8] sm:$0xff]  ;;  %v1433_v20 = vpack.c.bf16 %v36_v17, %v32_v16  ;;  %v40_v22 = vld [vmem:[%s2336_s1 + $0xc0] sm:$0xff]  ;;  %v27_v37 = vld [vmem:[%s2336_s1 + $0x58] sm:$0xff]  ;;  %v1776_v39 = vpack.c.bf16 %v82_v35, %v81_v34 }
   0x8   :  { %v45_v19 = vld [vmem:[%s2336_s1 + $0xe8] sm:$0xff]  ;;  %v44_v23 = vld [vmem:[%s2336_s1 + $0xe0] sm:$0xff]  ;;  %v65_v40 = vld [vmem:[%s2337_s2 + $0x10] sm:$0xff] }
   0x9   :  { %v1435_v21 = vpack.c.bf16 %v45_v19, %v41_v18  ;;  %v79_v28 = vld [vmem:[%s2337_s2 + $0x80] sm:$0xff]  ;;  %v80_v29 = vld [vmem:[%s2337_s2 + $0x88] sm:$0xff]  ;;  %v1437_v31 = vpack.c.bf16 %v44_v23, %v40_v22  ;;  %v66_v41 = vld [vmem:[%s2337_s2 + $0x18] sm:$0xff] }
   0xa   :  { %1430 = vmatpush1.bf16.msra.mxu1 %v1429_v14  ;;  %v63_v30 = vld [vmem:[%s2337_s2] sm:$0xff]  ;;  %v1760_v32 = vpack.c.bf16 %v80_v29, %v79_v28  ;;  %v64_v33 = vld [vmem:[%s2337_s2 + $0x8] sm:$0xff]  ;;  %v31_v42 = vld [vmem:[%s2336_s1 + $0x78] sm:$0xff]  ;;  %v1801_v47 = vpack.c.bf16 %v66_v41, %v65_v40 }
   0xb   :  { %1432 = vmatprep.subr.bf16.mxu1 %v1431_v15  ;;  %v1774_v38 = vpack.c.bf16 %v64_v33, %v63_v30  ;;  %v83_v43 = vld [vmem:[%s2337_s2 + $0xa0] sm:$0xff]  ;;  %v84_v44 = vld [vmem:[%s2337_s2 + $0xa8] sm:$0xff]  ;;  %v26_v46 = vld [vmem:[%s2336_s1 + $0x50] sm:$0xff] }
   0xc   :  { %1456 = vmatprep.subr.bf16.mxu0 %v1760_v32  ;;  %v15_v45 = vld [vmem:[%s2335_s0] sm:$0x3]  ;;  %v68_v50 = vld [vmem:[%s2337_s2 + $0x28] sm:$0xff] }
   0xd   :  { %1458 = vmatpush3.bf16.msra.mxu0 %v1774_v38  ;;  %v67_v49 = vld [vmem:[%s2337_s2 + $0x20] sm:$0xff] }
   0xe   :  { %1434 = vmatpush1.bf16.msra.mxu1 %v1433_v20  ;;  %1460 = vmatprep.subr.bf16.mxu0 %v1776_v39 }
   0xf   :  { %1436 = vmatprep.subr.bf16.mxu1 %v1435_v21 }
  0x12   :  { %1438 = vmatpush1.bf16.msra.mxu1 %v1437_v31 }
  0x13   :  { %8 = vsyncpa [#allocation3], 0  ;;  %1440 = vmatprep.subr.bf16.mxu1 %v1439_v36  ;;  %v1443_v51 = vpack.c.bf16 %v31_v42, %v27_v37  ;;  %v30_v52 = vld [vmem:[%s2336_s1 + $0x70] sm:$0xff]  ;;  %v1813_v53 = vpack.c.bf16 %v84_v44, %v83_v43  ;;  %v86_v55 = vld [vmem:[%s2337_s2 + $0xb8] sm:$0xff]  ;;  %1462 = vmatpush3.bf16.msra.mxu0 %v1801_v47  ;;  %v1829_v58 = vpack.c.bf16 %v68_v50, %v67_v49  ;;  %vm313_vm1 = vcmask 1041408   ;;  %s1669_s20 = smov [#allocation2]  }
  0x14   :  { %v85_v54 = vld [vmem:[%s2337_s2 + $0xb0] sm:$0xff]  ;;  %v35_v56 = vld [vmem:[%s2336_s1 + $0x98] sm:$0xff]  ;;  %v1445_v59 = vpack.c.bf16 %v30_v52, %v26_v46  ;;  %v87_v11 = vld [vmem:[%s2337_s2 + $0xc0] sm:$0xff]  ;;  %vm1666_vm2 = vmmov 1   ;;  %vm483_vm4 = vcmask 80896   ;;  %vm1668_vm5 = vmmov 0  }
  0x15   :  { %v39_v57 = vld [vmem:[%s2336_s1 + $0xb8] sm:$0xff]  ;;  %1202 = vmatmul.mubr.msk.f32.vlgmr.msra.gmra.mrb[0].mxu1 %vm167_vm0, %v15_v45  ;;  %v1832_v60 = vpack.c.bf16 %v86_v55, %v85_v54  ;;  %v69_v61 = vld [vmem:[%s2337_s2 + $0x30] sm:$0xff]  ;;  %1464 = vmatprep.subr.bf16.mxu0 %v1813_v53  ;;  %v88_v12 = vld [vmem:[%s2337_s2 + $0xc8] sm:$0xff]  ;;  %vm1110_vm6 = vcmask 1043456   ;;  %vm1106_vm7 = vcmask 162816   ;;  %s1192_s21 = sshll.u32 %s1669_s20, 4  ;;  %s1193_s21 = int_to_ptr.vmem [resolvable:$true] %s1192_s21 }
  0x16   :  { %1442 = vmatpush1.bf16.msra.mxu1 %v1441_v48  ;;  %306 = vmatprep.mubr.f32.mxu1 %v1665_v7  ;;  %v70_v62 = vld [vmem:[%s2337_s2 + $0x38] sm:$0xff]  ;;  %v1447_v63 = vpack.c.bf16 %v39_v57, %v35_v56  ;;  %v34_v0 = vld [vmem:[%s2336_s1 + $0x90] sm:$0xff]  ;;  %v111_v13 = vld [vmem:[%s2337_s2 + $0x180] sm:$0xff]  ;;  %v1874_v14 = vpack.c.bf16 %v88_v12, %v87_v11  ;;  %vm1184_vm8 = vcmask 74752   ;;  %p1646_p1 = scmp.lt.s32.totalorder %s1193_s21, %s1193_s21 }
  0x17   :  { %1444 = vmatprep.subr.bf16.mxu1 %v1443_v51  ;;  %v38_v1 = vld [vmem:[%s2336_s1 + $0xb0] sm:$0xff]  ;;  %v43_v2 = vld [vmem:[%s2336_s1 + $0xd8] sm:$0xff]  ;;  %1466 = vmatpush3.bf16.msra.mxu0 %v1829_v58  ;;  %v1854_v4 = vpack.c.bf16 %v70_v62, %v69_v61  ;;  %v112_v15 = vld [vmem:[%s2337_s2 + $0x188] sm:$0xff] }
  0x18   :  { %v47_v3 = vld [vmem:[%s2336_s1 + $0xf8] sm:$0xff]  ;;  %v1449_v5 = vpack.c.bf16 %v38_v1, %v34_v0  ;;  %1468 = vmatprep.subr.bf16.mxu0 %v1832_v60  ;;  %v42_v8 = vld [vmem:[%s2336_s1 + $0xd0] sm:$0xff]  ;;  %v71_v16 = vld [vmem:[%s2337_s2 + $0x40] sm:$0xff]  ;;  %v1885_v18 = vpack.c.bf16 %v112_v15, %v111_v13 }
  0x19   :  { %v1451_v6 = vpack.c.bf16 %v47_v3, %v43_v2  ;;  %v46_v9 = vld [vmem:[%s2336_s1 + $0xf0] sm:$0xff]  ;;  %v72_v17 = vld [vmem:[%s2337_s2 + $0x48] sm:$0xff]  ;;  %v95_v20 = vld [vmem:[%s2337_s2 + $0x100] sm:$0xff] }
  0x1a   :  { %1446 = vmatpush1.bf16.msra.mxu1 %v1445_v59  ;;  %v1453_v10 = vpack.c.bf16 %v46_v9, %v42_v8  ;;  %v1887_v19 = vpack.c.bf16 %v72_v17, %v71_v16  ;;  %v96_v21 = vld [vmem:[%s2337_s2 + $0x108] sm:$0xff]  ;;  %v89_v23 = vld [vmem:[%s2337_s2 + $0xd0] sm:$0xff]  ;;  %v90_v24 = vld [vmem:[%s2337_s2 + $0xd8] sm:$0xff] }
  0x1b   :  { %1448 = vmatprep.subr.bf16.mxu1 %v1447_v63  ;;  %1470 = vmatpush3.bf16.msra.mxu0 %v1854_v4  ;;  %v1896_v22 = vpack.c.bf16 %v96_v21, %v95_v20  ;;  %v113_v25 = vld [vmem:[%s2337_s2 + $0x190] sm:$0xff]  ;;  %v1910_v26 = vpack.c.bf16 %v90_v24, %v89_v23  ;;  %v114_v27 = vld [vmem:[%s2337_s2 + $0x198] sm:$0xff]  ;;  %v91_v36 = vld [vmem:[%s2337_s2 + $0xe0] sm:$0xff] }
  0x1c   :  { %1472 = vmatprep.subr.bf16.mxu0 %v1874_v14  ;;  %v73_v28 = vld [vmem:[%s2337_s2 + $0x50] sm:$0xff]  ;;  %v74_v29 = vld [vmem:[%s2337_s2 + $0x58] sm:$0xff]  ;;  %v1921_v30 = vpack.c.bf16 %v114_v27, %v113_v25  ;;  %v92_v37 = vld [vmem:[%s2337_s2 + $0xe8] sm:$0xff] }
  0x1d   :  { %v1923_v31 = vpack.c.bf16 %v74_v29, %v73_v28  ;;  %v97_v33 = vld [vmem:[%s2337_s2 + $0x110] sm:$0xff]  ;;  %v98_v34 = vld [vmem:[%s2337_s2 + $0x118] sm:$0xff]  ;;  %v115_v40 = vld [vmem:[%s2337_s2 + $0x1a0] sm:$0xff]  ;;  %v1946_v41 = vpack.c.bf16 %v92_v37, %v91_v36  ;;  %v147_v37 = vlaneseq }
  0x1e   :  { %1450 = vmatpush1.bf16.msra.mxu1 %v1449_v5  ;;  %v1932_v35 = vpack.c.bf16 %v98_v34, %v97_v33  ;;  %v116_v42 = vld [vmem:[%s2337_s2 + $0x1a8] sm:$0xff]  ;;  %v75_v43 = vld [vmem:[%s2337_s2 + $0x60] sm:$0xff]  ;;  %v93_v51 = vld [vmem:[%s2337_s2 + $0xf0] sm:$0xff] }
  0x1f   :  { %1452 = vmatprep.subr.bf16.mxu1 %v1451_v6  ;;  %1474 = vmatpush3.bf16.msra.mxu0 %v1887_v19  ;;  %v76_v44 = vld [vmem:[%s2337_s2 + $0x68] sm:$0xff]  ;;  %v99_v48 = vld [vmem:[%s2337_s2 + $0x120] sm:$0xff]  ;;  %v94_v52 = vld [vmem:[%s2337_s2 + $0xf8] sm:$0xff] }
  0x20   :  { %1476 = vmatprep.subr.bf16.mxu0 %v1910_v26  ;;  %v1959_v46 = vpack.c.bf16 %v76_v44, %v75_v43  ;;  %v100_v49 = vld [vmem:[%s2337_s2 + $0x128] sm:$0xff]  ;;  %v117_v54 = vld [vmem:[%s2337_s2 + $0x1b0] sm:$0xff]  ;;  %v1981_v55 = vpack.c.bf16 %v94_v52, %v93_v51  ;;  %v118_v56 = vld [vmem:[%s2337_s2 + $0x1b8] sm:$0xff] }
  0x21   :  { %v1968_v50 = vpack.c.bf16 %v100_v49, %v99_v48  ;;  %v77_v57 = vld [vmem:[%s2337_s2 + $0x70] sm:$0xff]  ;;  %v78_v59 = vld [vmem:[%s2337_s2 + $0x78] sm:$0xff]  ;;  %v1993_v61 = vpack.c.bf16 %v118_v56, %v117_v54  ;;  %v119_v2 = vld [vmem:[%s2337_s2 + $0x1c0] sm:$0xff] }
  0x22   :  { %1454 = vmatpush1.bf16.msra.mxu1 %v1453_v10  ;;  %v1995_v62 = vpack.c.bf16 %v78_v59, %v77_v57  ;;  %v101_v63 = vld [vmem:[%s2337_s2 + $0x130] sm:$0xff]  ;;  %v102_v0 = vld [vmem:[%s2337_s2 + $0x138] sm:$0xff]  ;;  %v120_v3 = vld [vmem:[%s2337_s2 + $0x1c8] sm:$0xff] }
  0x23   :  { %1488 = vmatprep.subr.bf16.mxu1 %v1885_v18  ;;  %1478 = vmatpush3.bf16.msra.mxu0 %v1923_v31  ;;  %v2004_v1 = vpack.c.bf16 %v102_v0, %v101_v63  ;;  %v2015_v5 = vpack.c.bf16 %v120_v3, %v119_v2  ;;  %v103_v6 = vld [vmem:[%s2337_s2 + $0x140] sm:$0xff]  ;;  %v104_v8 = vld [vmem:[%s2337_s2 + $0x148] sm:$0xff]  ;;  %v121_v10 = vld [vmem:[%s2337_s2 + $0x1d0] sm:$0xff] }
  0x24   :  { %1480 = vmatprep.subr.bf16.mxu0 %v1946_v41  ;;  %v2023_v9 = vpack.c.bf16 %v104_v8, %v103_v6  ;;  %v122_v11 = vld [vmem:[%s2337_s2 + $0x1d8] sm:$0xff]  ;;  %v105_v13 = vld [vmem:[%s2337_s2 + $0x150] sm:$0xff]  ;;  %v123_v17 = vld [vmem:[%s2337_s2 + $0x1e0] sm:$0xff] }
  0x25   :  { %1203 = vmatmul.mubr.msk.f32.vlgmr.msra.gmra.mrb[2].mxu1 %vm167_vm0, %v15_v45  ;;  %v1957_v45 = vpack.c.bf16 %v116_v42, %v115_v40  ;;  %v2033_v12 = vpack.c.bf16 %v122_v11, %v121_v10  ;;  %v106_v15 = vld [vmem:[%s2337_s2 + $0x158] sm:$0xff]  ;;  %v124_v20 = vld [vmem:[%s2337_s2 + $0x1e8] sm:$0xff]  ;;  %v107_v23 = vld [vmem:[%s2337_s2 + $0x160] sm:$0xff]  ;;  %v2082_v40 = vshrl.u32 %v147_v37, 7 }
  0x26   :  { %1490 = vmatpush3.bf16.msra.mxu1 %v1896_v22  ;;  %v2041_v16 = vpack.c.bf16 %v106_v15, %v105_v13  ;;  %v2051_v21 = vpack.c.bf16 %v124_v20, %v123_v17  ;;  %v108_v24 = vld [vmem:[%s2337_s2 + $0x168] sm:$0xff]  ;;  %v125_v27 = vld [vmem:[%s2337_s2 + $0x1f0] sm:$0xff]  ;;  %v126_v28 = vld [vmem:[%s2337_s2 + $0x1f8] sm:$0xff] }
  0x27   :  { %1492 = vmatprep.subr.bf16.mxu1 %v1921_v30  ;;  %1482 = vmatpush3.bf16.msra.mxu0 %v1959_v46  ;;  %v2059_v25 = vpack.c.bf16 %v108_v24, %v107_v23  ;;  %v2069_v29 = vpack.c.bf16 %v126_v28, %v125_v27  ;;  %v109_v33 = vld [vmem:[%s2337_s2 + $0x170] sm:$0xff]  ;;  %v110_v34 = vld [vmem:[%s2337_s2 + $0x178] sm:$0xff]  ;;  %v2085_v42 = vsub.s32 0, %v2082_v40  ;;  %v153_v44 = vsub.s32 1, %v2082_v40  ;;  %vm2145_vm3 = vmpackc.low %vm313_vm1, %vm1666_vm2 }
  0x28   :  { %1484 = vmatprep.subr.bf16.mxu0 %v1981_v55  ;;  %v2077_v36 = vpack.c.bf16 %v110_v34, %v109_v33  ;;  %v1200_v43 = vld [vmem:[%s2336_s1 + $0x100] ss:$8 sm:$0xf]  ;;  %v157_v6 = vsub.s32 2, %v2082_v40  ;;  %v161_v11 = vsub.s32 3, %v2082_v40 }
  0x29   :  { %v150_v48 = vrot.slane %v1200_v43, %v2085_v42  ;;  %v154_v49 = vrot.slane %v1200_v43, %v153_v44 }
  0x2a   :  { %1494 = vmatpush3.bf16.msra.mxu1 %v1932_v35  ;;  %v158_v17 = vrot.slane %v1200_v43, %v157_v6  ;;  %v162_v23 = vrot.slane %v1200_v43, %v161_v11 }
  0x2b   :  { %1496 = vmatprep.subr.bf16.mxu1 %v1957_v45  ;;  %1486 = vmatpush3.bf16.msra.mxu0 %v1995_v62 }
  0x2e   :  { %1498 = vmatpush3.bf16.msra.mxu1 %v1968_v50 }
  0x2f   :  { %1500 = vmatprep.subr.bf16.mxu1 %v1993_v61 }
  0x32   :  { %1502 = vmatpush3.bf16.msra.mxu1 %v2004_v1 }
  0x33   :  { %1504 = vmatprep.subr.bf16.mxu1 %v2015_v5 }
  0x36   :  { %1506 = vmatpush3.bf16.msra.mxu1 %v2023_v9 }
  0x37   :  { %1508 = vmatprep.subr.bf16.mxu1 %v2033_v12 }
  0x3a   :  { %1510 = vmatpush3.bf16.msra.mxu1 %v2041_v16 }
  0x3b   :  { %1512 = vmatprep.subr.bf16.mxu1 %v2051_v21 }
  0x3e   :  { %1514 = vmatpush3.bf16.msra.mxu1 %v2059_v25 }
  0x3f   :  { %1516 = vmatprep.subr.bf16.mxu1 %v2069_v29 }
  0x42   :  { %1518 = vmatpush3.bf16.msra.mxu1 %v2077_v36 }
  0x43   :  { %1564 = vmatprep.subr.bf16.mxu1 %v1885_v18 }
  0xe8   :  { %v237_v51 = vpop.f32.mrb[0].mxu1 }
  0xe9   :  { %v2094_v18 = vadd.f32 %v237_v51, %v150_v48  ;;  %v239_v52 = vpop.f32.mrb[1].mxu1 }
  0xea   :  { %v2096_v54 = vadd.f32 %v239_v52, %v154_v49 }
  0xeb   :  { %v314_v56 = vsel %vm313_vm1, %v2094_v18, 0.0 }
  0xec   :  { %v315_v57 = vrot.slane %v314_v56, 4  ;;  %v321_v59 = vsel %vm313_vm1, %v2096_v54, 0.0 }
  0xed   :  { %v322_v63 = vrot.slane %v321_v59, 4 }
  0xee   :  { %v316_v0 = vadd.f32 %v315_v57, %v314_v56 }
  0xef   :  { %v323_v2 = vadd.f32 %v322_v63, %v321_v59 }
  0xf0   :  { %v317_v3 = vrot.slane %v316_v0, 2 }
  0xf1   :  { %v324_v8 = vrot.slane %v323_v2, 2 }
  0xf2   :  { %v318_v10 = vadd.f32 %v317_v3, %v316_v0 }
  0xf3   :  { %v325_v13 = vadd.f32 %v324_v8, %v323_v2 }
  0xf4   :  { %v319_v15 = vrot.slane %v318_v10, 1 }
  0xf5   :  { %v326_v20 = vrot.slane %v325_v13, 1 }
  0xf6   :  { %v320_v28 = vadd.f32 %v319_v15, %v318_v10  ;;  %v57_v15 = vld [vmem:[%s2336_s1 + $0x130] sm:$0xff] }
  0xf7   :  { %v327_v24 = vadd.f32 %v326_v20, %v325_v13 }
  0xf8   :  { %v308_v27 = vpop.f32.mrb[2].mxu1 }
  0xf9   :  { %v2108_v33 = vadd.f32 %v308_v27, %v158_v17  ;;  %v310_v34 = vpop.f32.mrb[3].mxu1  ;;  %406 = vmatprep.mubr.f32.mxu0 %v327_v24  ;;  %v61_v17 = vld [vmem:[%s2336_s1 + $0x150] sm:$0x3] }
  0xfa   :  { %v2110_v37 = vadd.f32 %v310_v34, %v162_v23  ;;  %407 = vmatmul.mubr.f32.vlgmr.msra.gmra.mrb[0].mxu0 %v320_v28  ;;  %v2172_v23 = vpack.c.bf16 %v61_v17, %v57_v15 }
  0xfb   :  { %v328_v48 = vsel %vm313_vm1, %v2108_v33, 0.0  ;;  %563 = vmatprep.mubr.f32.mxu0 %v1665_v7 }
  0xfc   :  { %v329_v49 = vrot.slane %v328_v48, 4  ;;  %v335_v51 = vsel %vm313_vm1, %v2110_v37, 0.0 }
  0xfd   :  { %v336_v43 = vrot.slane %v335_v51, 4 }
  0xfe   :  { %v330_v52 = vadd.f32 %v329_v49, %v328_v48 }
  0xff   :  { %v337_v56 = vadd.f32 %v336_v43, %v335_v51 }
 0x100   :  { %v331_v57 = vrot.slane %v330_v52, 2 }
 0x101   :  { %v338_v59 = vrot.slane %v337_v56, 2 }
 0x102   :  { %v332_v63 = vadd.f32 %v331_v57, %v330_v52 }
 0x103   :  { %v339_v0 = vadd.f32 %v338_v59, %v337_v56 }
 0x104   :  { %v333_v2 = vrot.slane %v332_v63, 1 }
 0x105   :  { %v340_v3 = vrot.slane %v339_v0, 1 }
 0x106   :  { %v334_v10 = vadd.f32 %v333_v2, %v332_v63 }
 0x107   :  { %v341_v8 = vadd.f32 %v340_v3, %v339_v0 }
 0x109   :  { %476 = vmatprep.mubr.f32.mxu1 %v341_v8 }
 0x10a   :  { %477 = vmatmul.mubr.f32.vlgmr.msra.gmra.mrb[4].mxu1 %v334_v10 }
 0x10b   :  { %1566 = vmatpush3.bf16.msra.mxu1 %v1896_v22  ;;  %v56_v22 = vld [vmem:[%s2336_s1 + $0x128] sm:$0xff] }
 0x10c   :  { %1568 = vmatprep.subr.bf16.mxu1 %v1921_v30  ;;  %v60_v30 = vld [vmem:[%s2336_s1 + $0x148] sm:$0x3] }
 0x10f   :  { %1570 = vmatpush3.bf16.msra.mxu1 %v1932_v35  ;;  %v1519_v35 = vpack.c.bf16 %v60_v30, %v56_v22 }
 0x110   :  { %1572 = vmatprep.subr.bf16.mxu1 %v1957_v45  ;;  %v55_v45 = vld [vmem:[%s2336_s1 + $0x120] sm:$0xff] }
 0x111   :  { %1521 = vmatprep.subr.msk.bf16.mxu0 %vm2145_vm3, %v1519_v35 }
 0x113   :  { %1574 = vmatpush3.bf16.msra.mxu1 %v1968_v50  ;;  %v59_v50 = vld [vmem:[%s2336_s1 + $0x140] sm:$0x3] }
 0x114   :  { %1576 = vmatprep.subr.bf16.mxu1 %v1993_v61  ;;  %v127_v61 = vld [vmem:[%s2337_s2 + $0x200] sm:$0xff] }
 0x117   :  { %1578 = vmatpush3.bf16.msra.mxu1 %v2004_v1  ;;  %v2149_v1 = vpack.c.bf16 %v59_v50, %v55_v45 }
 0x118   :  { %1580 = vmatprep.subr.bf16.mxu1 %v2015_v5  ;;  %v58_v5 = vld [vmem:[%s2336_s1 + $0x138] sm:$0xff] }
 0x119   :  { %1524 = vmatpush1.bf16.msk.msra.mxu0 %vm2145_vm3, %v2149_v1 }
 0x11b   :  { %1582 = vmatpush3.bf16.msra.mxu1 %v2023_v9  ;;  %v62_v9 = vld [vmem:[%s2336_s1 + $0x158] sm:$0x3] }
 0x11c   :  { %1584 = vmatprep.subr.bf16.mxu1 %v2033_v12  ;;  %v1525_v12 = vpack.c.bf16 %v62_v9, %v58_v5 }
 0x11e   :  { %1527 = vmatprep.subr.msk.bf16.mxu0 %vm2145_vm3, %v1525_v12 }
 0x11f   :  { %1586 = vmatpush3.bf16.msra.mxu1 %v2041_v16 }
 0x120   :  { %1588 = vmatprep.subr.bf16.mxu1 %v2051_v21 }
 0x123   :  { %1590 = vmatpush3.bf16.msra.mxu1 %v2059_v25 }
 0x124   :  { %1592 = vmatprep.subr.bf16.mxu1 %v2069_v29 }
 0x127   :  { %1594 = vmatpush3.bf16.msra.mxu1 %v2077_v36 }
 0x128   :  { %1603 = vmatprep.subr.msk.bf16.mxu1 %vm2145_vm3, %v1525_v12  ;;  %v1667_v12 = vmov 0.0|0.0  }
 0x1cd   :  { %v1250_v16 = vpop.f32.mrb[0].mxu0 }
 0x1ce   :  { %v1251_v21 = vpop.f32.mrb[1].mxu0 }
 0x1cf   :  { %v1252_v25 = vadd.f32 %v1251_v21, %v1250_v16 }
 0x1dd   :  { %v1285_v29 = vpop.f32.mrb[4].mxu1 }
 0x1de   :  { %v1286_v36 = vpop.f32.mrb[5].mxu1 }
 0x1df   :  { %v1287_v13 = vadd.f32 %v1286_v36, %v1285_v29 }
 0x1e1   :  { %v479_v20 = vadd.f32 %v1287_v13, %v1252_v25 }
 0x1e3   :  { %v482_v24 = vmul.f32 0.013888889, %v479_v20 }
 0x1e5   :  { %1206 = vmatmul.mubr.msk.f32.vlgmr.msra.gmra.mrb[2].mxu0 %vm483_vm4, %v482_v24 }
 0x1e6   :  { %1530 = vmatpush1.bf16.msk.msra.mxu0 %vm2145_vm3, %v2172_v23  ;;  %634 = vmatprep.mubr.f32.mxu0 %v1665_v7 }
 0x1e7   :  { %1532 = vmatprep.subr.bf16.mxu0 %v1760_v32 }
 0x1e9   :  { %1209 = vmatmul.mubr.msk.f32.vlgmr.msra.gmra.mrb[4].mxu0 %vm483_vm4, %v482_v24  ;;  %v52_v24 = vld [vmem:[%s2336_s1 + $0x102] ss:$0 sm:$0xff] }
 0x1ea   :  { %1534 = vmatpush3.bf16.msra.mxu0 %v1774_v38 }
 0x1eb   :  { %1536 = vmatprep.subr.bf16.mxu0 %v1776_v39 }
 0x1ee   :  { %1538 = vmatpush3.bf16.msra.mxu0 %v1801_v47 }
 0x1ef   :  { %1540 = vmatprep.subr.bf16.mxu0 %v1813_v53 }
 0x1f2   :  { %1542 = vmatpush3.bf16.msra.mxu0 %v1829_v58 }
 0x1f3   :  { %1544 = vmatprep.subr.bf16.mxu0 %v1832_v60 }
 0x1f6   :  { %1546 = vmatpush3.bf16.msra.mxu0 %v1854_v4 }
 0x1f7   :  { %1548 = vmatprep.subr.bf16.mxu0 %v1874_v14 }
 0x1fa   :  { %1550 = vmatpush3.bf16.msra.mxu0 %v1887_v19 }
 0x1fb   :  { %1552 = vmatprep.subr.bf16.mxu0 %v1910_v26 }
 0x1fe   :  { %1554 = vmatpush3.bf16.msra.mxu0 %v1923_v31 }
 0x1ff   :  { %1556 = vmatprep.subr.bf16.mxu0 %v1946_v41 }
 0x202   :  { %1558 = vmatpush3.bf16.msra.mxu0 %v1959_v46 }
 0x203   :  { %1560 = vmatprep.subr.bf16.mxu0 %v1981_v55 }
 0x206   :  { %1562 = vmatpush3.bf16.msra.mxu0 %v1995_v62 }
 0x207   :  { %1597 = vmatprep.subr.msk.bf16.mxu0 %vm2145_vm3, %v1519_v35 }
 0x2b8   :  { %v565_v32 = vpop.f32.mrb[2].mxu0 }
 0x2b9   :  { %v644_v38 = vrot.slane %v565_v32, %v2085_v42  ;;  %v567_v39 = vpop.f32.mrb[3].mxu0 }
 0x2ba   :  { %v648_v47 = vrot.slane %v567_v39, %v2085_v42 }
 0x2bb   :  { %v2201_v53 = vsub.f32 %v2094_v18, %v644_v38 }
 0x2bc   :  { %v2204_v58 = vsub.f32 %v2096_v54, %v648_v47  ;;  %v636_v60 = vpop.f32.mrb[4].mxu0  ;;  %v129_v47 = vld [vmem:[%s2337_s2 + $0x210] sm:$0xff] }
 0x2bd   :  { %v661_v4 = vmul.f32 %v2201_v53, %v2201_v53  ;;  %v652_v14 = vrot.slane %v636_v60, %v2085_v42  ;;  %v638_v19 = vpop.f32.mrb[5].mxu0  ;;  %v130_v60 = vld [vmem:[%s2337_s2 + $0x218] sm:$0xff] }
 0x2be   :  { %v662_v26 = vmul.f32 %v2204_v58, %v2204_v58  ;;  %v656_v31 = vrot.slane %v638_v19, %v2085_v42  ;;  %v132_v19 = vld [vmem:[%s2337_s2 + $0x228] sm:$0xff] }
 0x2bf   :  { %v665_v41 = vsel %vm313_vm1, %v661_v4, 0.0  ;;  %v2214_v46 = vsub.f32 %v2108_v33, %v652_v14  ;;  %v1611_v4 = vpack.c.bf16 %v130_v60, %v129_v47  ;;  %v131_v14 = vld [vmem:[%s2337_s2 + $0x220] sm:$0xff] }
 0x2c0   :  { %v666_v55 = vrot.slane %v665_v41, 4  ;;  %v672_v62 = vsel %vm313_vm1, %v662_v26, 0.0  ;;  %v2218_v18 = vsub.f32 %v2110_v37, %v656_v31  ;;  %v1614_v26 = vpack.c.bf16 %v132_v19, %v131_v14  ;;  %v133_v31 = vld [vmem:[%s2337_s2 + $0x230] sm:$0xff] }
 0x2c1   :  { %v673_v54 = vrot.slane %v672_v62, 4  ;;  %v663_v27 = vmul.f32 %v2214_v46, %v2214_v46 }
 0x2c2   :  { %v667_v28 = vadd.f32 %v666_v55, %v665_v41  ;;  %v664_v34 = vmul.f32 %v2218_v18, %v2218_v18  ;;  %v134_v41 = vld [vmem:[%s2337_s2 + $0x238] sm:$0xff] }
 0x2c3   :  { %v674_v48 = vadd.f32 %v673_v54, %v672_v62  ;;  %v679_v49 = vsel %vm313_vm1, %v663_v27, 0.0  ;;  %v1617_v55 = vpack.c.bf16 %v134_v41, %v133_v31  ;;  %v135_v62 = vld [vmem:[%s2337_s2 + $0x240] sm:$0xff]  ;;  %v136_v54 = vld [vmem:[%s2337_s2 + $0x248] sm:$0xff] }
 0x2c4   :  { %v668_v51 = vrot.slane %v667_v28, 2  ;;  %v680_v33 = vrot.slane %v679_v49, 4  ;;  %v686_v43 = vsel %vm313_vm1, %v664_v34, 0.0  ;;  %v1620_v27 = vpack.c.bf16 %v136_v54, %v135_v62  ;;  %v138_v34 = vld [vmem:[%s2337_s2 + $0x258] sm:$0xff] }
 0x2c5   :  { %v687_v52 = vrot.slane %v686_v43, 4  ;;  %v675_v56 = vrot.slane %v674_v48, 2 }
 0x2c6   :  { %v681_v57 = vadd.f32 %v680_v33, %v679_v49  ;;  %v669_v37 = vadd.f32 %v668_v51, %v667_v28  ;;  %v137_v28 = vld [vmem:[%s2337_s2 + $0x250] sm:$0xff]  ;;  %v139_v49 = vld [vmem:[%s2337_s2 + $0x260] sm:$0xff]  ;;  %v140_v51 = vld [vmem:[%s2337_s2 + $0x268] sm:$0xff] }
 0x2c7   :  { %v688_v59 = vadd.f32 %v687_v52, %v686_v43  ;;  %v676_v63 = vadd.f32 %v675_v56, %v674_v48  ;;  %v1623_v48 = vpack.c.bf16 %v138_v34, %v137_v28  ;;  %v1626_v33 = vpack.c.bf16 %v140_v51, %v139_v49  ;;  %v141_v43 = vld [vmem:[%s2337_s2 + $0x270] sm:$0xff]  ;;  %v142_v52 = vld [vmem:[%s2337_s2 + $0x278] sm:$0xff] }
 0x2c8   :  { %v682_v0 = vrot.slane %v681_v57, 2  ;;  %v670_v2 = vrot.slane %v669_v37, 1  ;;  %v1629_v56 = vpack.c.bf16 %v142_v52, %v141_v43 }
 0x2c9   :  { %v677_v3 = vrot.slane %v676_v63, 1  ;;  %v689_v8 = vrot.slane %v688_v59, 2 }
 0x2ca   :  { %v683_v10 = vadd.f32 %v682_v0, %v681_v57  ;;  %v671_v35 = vadd.f32 %v670_v2, %v669_v37  ;;  %v143_v57 = vld [vmem:[%s2337_s2 + $0x280] sm:$0xff]  ;;  %v144_v37 = vld [vmem:[%s2337_s2 + $0x288] sm:$0xff] }
 0x2cb   :  { %v678_v22 = vadd.f32 %v677_v3, %v676_v63  ;;  %v690_v30 = vadd.f32 %v689_v8, %v688_v59  ;;  %v1632_v59 = vpack.c.bf16 %v144_v37, %v143_v57  ;;  %v1201_v63 = vld [vmem:[%s2336_s1 + $0x101] ss:$8 sm:$0xf] }
 0x2cc   :  { %v684_v45 = vrot.slane %v683_v10, 1  ;;  %v1007_v8 = vrot.slane %v1201_v63, %v2085_v42 }
 0x2cd   :  { %757 = vmatprep.mubr.f32.mxu0 %v678_v22  ;;  %v691_v50 = vrot.slane %v690_v30, 1  ;;  %v1015_v22 = vrot.slane %v1201_v63, %v157_v6 }
 0x2ce   :  { %758 = vmatmul.mubr.f32.vlgmr.msra.gmra.mrb[6].mxu0 %v671_v35  ;;  %v685_v9 = vadd.f32 %v684_v45, %v683_v10 }
 0x2cf   :  { %v692_v5 = vadd.f32 %v691_v50, %v690_v30  ;;  %1600 = vmatpush1.bf16.msk.msra.mxu0 %vm2145_vm3, %v2149_v1  ;;  %905 = vmatprep.mubr.f32.mxu0 %v1665_v7 }
 0x2d0   :  { %1607 = vmatprep.subr.bf16.mxu0 %v1667_v12 }
 0x2d1   :  { %827 = vmatprep.mubr.f32.mxu1 %v692_v5  ;;  %v1019_v5 = vrot.slane %v1201_v63, %v161_v11  ;;  %v145_v11 = vld [vmem:[%s2337_s2 + $0x290] sm:$0xf] }
 0x2d2   :  { %828 = vmatmul.mubr.f32.vlgmr.msra.gmra.mrb[6].mxu1 %v685_v9 }
 0x2d3   :  { %1606 = vmatpush1.bf16.msk.msra.mxu1 %vm2145_vm3, %v2172_v23  ;;  %976 = vmatprep.mubr.f32.mxu1 %v1665_v7  ;;  %v128_v23 = vld [vmem:[%s2337_s2 + $0x208] sm:$0xff]  ;;  %s1641_s2 = scalar_lea.vmem %s1193_s21, 32 }
 0x2d4   :  { %1631 = vmatprep.subr.bf16.mxu1 %v1667_v12  ;;  %v1608_v38 = vpack.c.bf16 %v128_v23, %v127_v61  ;;  %v54_v61 = vld [vmem:[%s2336_s1 + $0x104] ss:$0 sm:$0xff]  ;;  %p1642_p0 = scmp.ne.s32.totalorder %s1193_s21, %s1641_s2  ;;  %p1647_p2 = scmp.lt.s32.totalorder %s1641_s2, %s1641_s2 }
 0x2d6   :  { %p1648_p3 = por %p1647_p2, %p1646_p1 }
 0x2d8   :  { %p1649_p4 = pnand %p1648_p3, %p1642_p0 }
 0x3a1   :  { %v1320_v16 = vpop.f32.mrb[6].mxu0 }
 0x3a2   :  { %v1321_v21 = vpop.f32.mrb[7].mxu0 }
 0x3a3   :  { %v1322_v25 = vadd.f32 %v1321_v21, %v1320_v16 }
 0x3a5   :  { %v1355_v29 = vpop.f32.mrb[6].mxu1 }
 0x3a6   :  { %v1356_v36 = vpop.f32.mrb[7].mxu1 }
 0x3a7   :  { %v1357_v1 = vadd.f32 %v1356_v36, %v1355_v29 }
 0x3a9   :  { %v830_v13 = vadd.f32 %v1357_v1, %v1322_v25 }
 0x3ab   :  { %v833_v15 = vmul.f32 0.013888889, %v830_v13 }
 0x3ad   :  { %v834_v17 = vmax.f32 %v833_v15, 0.0 }
 0x3af   :  { %v835_v20 = vadd.f32 1e-05, %v834_v17 }
 0x3b1   :  { %1639 = vrsqrt.f32 %v835_v20 }
 0x3bb   :  { %v1640_v32 = vpop.eup %1639 }
 0x3bc   :  { %v837_v39 = vmul.f32 %v1640_v32, %v52_v24 }
 0x3be   :  { %1212 = vmatmul.mubr.msk.f32.vlgmr.msra.gmra.mrb[8].mxu0 %vm483_vm4, %v837_v39  ;;  %1215 = vmatmul.mubr.msk.f32.vlgmr.msra.gmra.mrb[8].mxu1 %vm483_vm4, %v837_v39 }
 0x3bf   :  { %1609 = vmatpush3.bf16.msra.mxu0 %v1608_v38  ;;  %1411 = vmatprep.mubr.msk.f32.mxu0 %vm1668_vm5, %v1665_v7 }
 0x3c0   :  { %1610 = vmatprep.subr.bf16.mxu0 %v1667_v12  ;;  %1420 = vmatprep.mubr.msk.f32.mxu1 %vm1668_vm5, %v1665_v7 }
 0x3c1   :  { %1633 = vmatpush3.bf16.msra.mxu1 %v1632_v59 }
 0x3c2   :  { %1418 = vmatprep.subr.mxu1 %v1665_v7  ;;  %v1011_v7 = vrot.slane %v1201_v63, %v153_v44 }
 0x3c3   :  { %1612 = vmatpush3.bf16.msra.mxu0 %v1611_v4 }
 0x3c4   :  { %1613 = vmatprep.subr.bf16.mxu0 %v1667_v12 }
 0x3c5   :  { %1419 = vmatpush3.msk.msra.mxu1 %vm1110_vm6, %v145_v11 }
 0x3c7   :  { %1615 = vmatpush3.bf16.msra.mxu0 %v1614_v26 }
 0x3c8   :  { %1616 = vmatprep.subr.bf16.mxu0 %v1667_v12 }
 0x3cb   :  { %1618 = vmatpush3.bf16.msra.mxu0 %v1617_v55 }
 0x3cc   :  { %1619 = vmatprep.subr.bf16.mxu0 %v1667_v12 }
 0x3cf   :  { %1621 = vmatpush3.bf16.msra.mxu0 %v1620_v27 }
 0x3d0   :  { %1622 = vmatprep.subr.bf16.mxu0 %v1667_v12 }
 0x3d3   :  { %1624 = vmatpush3.bf16.msra.mxu0 %v1623_v48 }
 0x3d4   :  { %1625 = vmatprep.subr.bf16.mxu0 %v1667_v12 }
 0x3d7   :  { %1627 = vmatpush3.bf16.msra.mxu0 %v1626_v33 }
 0x3d8   :  { %1628 = vmatprep.subr.bf16.mxu0 %v1667_v12 }
 0x3db   :  { %1630 = vmatpush3.bf16.msra.mxu0 %v1629_v56 }
 0x491   :  { %v907_v0 = vpop.f32.mrb[8].mxu0  ;;  %v978_v2 = vpop.f32.mrb[8].mxu1 }
 0x492   :  { %v986_v3 = vrot.slane %v907_v0, %v2085_v42  ;;  %v994_v10 = vrot.slane %v978_v2, %v2085_v42  ;;  %v909_v30 = vpop.f32.mrb[9].mxu0  ;;  %v980_v35 = vpop.f32.mrb[9].mxu1 }
 0x493   :  { %v990_v45 = vrot.slane %v909_v30, %v2085_v42  ;;  %v998_v50 = vrot.slane %v980_v35, %v2085_v42 }
 0x494   :  { %v999_v9 = vmul.f32 %v986_v3, %v2201_v53  ;;  %v1001_v12 = vmul.f32 %v994_v10, %v2214_v46  ;;  %v53_v53 = vld [vmem:[%s2336_s1 + $0x103] ss:$0 sm:$0xff] }
 0x495   :  { %v1000_v16 = vmul.f32 %v990_v45, %v2204_v58  ;;  %v1002_v6 = vmul.f32 %v998_v50, %v2218_v18 }
 0x496   :  { %v1024_v21 = vadd.f32 %v1007_v8, %v999_v9  ;;  %v1026_v25 = vadd.f32 %v1015_v22, %v1001_v12 }
 0x497   :  { %v1025_v29 = vadd.f32 %v1011_v7, %v1000_v16  ;;  %v1027_v36 = vadd.f32 %v1019_v5, %v1002_v6 }
 0x498   :  { %v1028_v1 = vmax.f32 %v1024_v21, 0.0  ;;  %v1030_v13 = vmax.f32 %v1026_v25, 0.0 }
 0x499   :  { %v1029_v44 = vmax.f32 %v1025_v29, 0.0  ;;  %v1031_v15 = vmax.f32 %v1027_v36, 0.0 }
 0x49b   :  { %v1032_v42 = vmax.f32 %v1028_v1, %v1029_v44  ;;  %v1033_v17 = vmax.f32 %v1030_v13, %v1031_v15 }
 0x49d   :  { %v1034_v40 = vmax.f32 %v1032_v42, %v1033_v17 }
 0x49f   :  { %1412 = vmatmul.mubr.f32.vlgmr.msra.gmra.mrb[10].mxu0 %v1034_v40 }
 0x572   :  { %v1101_v58 = vpop.f32.mrb[10].mxu0 }
 0x573   :  { %v1102_v46 = vadd.f32 %v1101_v58, %v53_v53  ;;  %v1413_v18 = vpop.f32.mrb[11].mxu0 }
 0x575   :  { %v1105_v20 = vmax.f32 %v1102_v46, 0.0 }
 0x577   :  { %1421 = vmatmul.mubr.msk.f32.vlgmr.msra.gmra.mrb[10].mxu1 %vm1106_vm7, %v1105_v20 }
 0x64a   :  { %v1180_v23 = vpop.f32.mrb[10].mxu1 }
 0x64b   :  { %v1181_v24 = vadd.f32 %v1180_v23, %v54_v61  ;;  %v1422_v32 = vpop.f32.mrb[11].mxu1 }
 0x64d   :  { %1185 = vst.msk [vmem:[#allocation2] sm:$0x3] %vm1184_vm8, %v1181_v24 }
 0x64e   :  { %1652 = shalt.err (!%p1649_p4)
}
 0x64f   :  { %s1653_s24 = scalar_lea.hbm %s2338_s3, 32 }
 0x650   :  { %p1654_p5 = scmp.ne.s32.totalorder %s2338_s3, %s1653_s24  ;;  %p1657_p6 = scmp.lt.u32.totalorder %s1653_s24, %s2338_s3 }
 0x652   :  { %p1659_p7 = pnand %p1657_p6, %p1654_p5 }
 0x654   :  { %1662 = shalt.err (!%p1659_p7)
}
 0x655   :  { %1195 = dma.vmem_to_hbm [thread:$0]  %s1193_s21, 32, %s2338_s3, [#allocation3]  }
 0x656   :  { %1663 = dma.done.wait [#allocation3], 32  }
 0x657   :  { %1664 = vsyncadd [#allocation3], 4294967264 }
 0x658   :  { %1199 = vsyncpa [#allocation3], 1 }

</bundles_post_ra>
